<compile_context>
chip_gen: v6e
topology: v6e:2x2x1
jax: 0.10.0
libtpu: 0.0.40
codegen_flags: <defaults>
</compile_context>

<pallas_src>
import functools

import jax
import jax.numpy as jnp
from jax.experimental import pallas as pl
from jax.experimental.pallas import tpu as pltpu


def _rotary_tables_kernel(inv_freq_ref, cos_ref, sin_ref, *, block_seq, half):
    """Compute one (block_seq, dim) tile of the cos/sin rotary tables."""
    i = pl.program_id(0)
    # Full-tile iota along the sublane axis -> natural layout, no (N,1)
    # column splat.  int32 iota + cast (cheap VPU op on an idle slot) is used
    # because fp32 iota lowering is less uniform across TPU generations.
    pos = (jax.lax.broadcasted_iota(jnp.int32, (block_seq, half), 0)
           + i * block_seq).astype(jnp.float32)
    angles = pos * inv_freq_ref[...]                 # (block_seq, half) fp32
    c = jnp.cos(angles).astype(cos_ref.dtype)        # EUP work on half dim only
    s = jnp.sin(angles).astype(sin_ref.dtype)
    # Duplicate into both halves with plain slice stores (no full-width
    # concatenate temporary -> no extra vst per vreg, friendly to v5e's
    # single store slot).
    cos_ref[:, :half] = c
    cos_ref[:, half:] = c
    sin_ref[:, :half] = s
    sin_ref[:, half:] = s


def _round_up(x, m):
    return ((x + m - 1) // m) * m


def _pick_block_seq(seq_len, dim, out_dtype):
    """Sequence tile: ~4 grid steps (>=2), 32-row aligned, <=~2 MiB/output tile."""
    itemsize = jnp.dtype(out_dtype).itemsize
    if seq_len <= 64:
        # Tiny tables: a single (multiple-of-8) block covering everything.
        return _round_up(max(seq_len, 8), 8)
    rows_target = pl.cdiv(seq_len, 4)                       # aim for ~4 steps
    rows_cap = max(32, (2 * 1024 * 1024) // max(1, dim * itemsize))
    block = max(32, min(rows_target, rows_cap))
    # Multiple of 32 rows: satisfies sublane packing for f32(8)/bf16(16)/int8(32).
    block = max(32, (block // 32) * 32)
    return block


def llama_rotary_embedding(x, dim, max_position_embeddings=2048, base=10000.0,
                           block_seq=None):
    """Return (cos, sin) of shape (1, 1, max_position_embeddings, dim) in x.dtype.

    Matches LlamaRotaryEmbedding.forward (which returns the full cached tables
    cast to x.dtype; the seq_len argument is ignored by the reference module).
    """
    assert dim % 2 == 0, "rotary dim must be even"
    out_dtype = x.dtype
    seq_len = max_position_embeddings
    half = dim // 2
    if block_seq is None:
        block_seq = _pick_block_seq(seq_len, dim, out_dtype)

    # Host-side constant setup (mirrors the PyTorch __init__): only the
    # unique half of the frequency vector is passed to the kernel.
    inv_freq_half = (1.0 / (base ** (jnp.arange(0, dim, 2, dtype=jnp.float32) / dim))
                     )[None, :]                                               # (1, half)

    grid = (pl.cdiv(seq_len, block_seq),)  # ragged tail via Pallas block padding

    itemsize = jnp.dtype(out_dtype).itemsize
    # Per-step VMEM: 2 outputs x double-buffer x tile + fp32 half-dim
    # intermediates + resident inv_freq + slack.  Capped at 48 MiB so this
    # stays safe on v7x's 64 MiB VMEM as well as v5e/v6e (128 MiB).
    vmem_bytes = (2 * 2 * block_seq * dim * itemsize
                  + 3 * block_seq * half * 4
                  + 2 * half * 4
                  + (1 << 20))
    vmem_limit = min(max(vmem_bytes, 16 * 1024 * 1024), 48 * 1024 * 1024)

    cost = pl.CostEstimate(
        flops=2 * seq_len * half,                     # pos build + pos*inv_freq
        transcendentals=2 * seq_len * half,           # cos + sin on the unique half
        bytes_accessed=2 * seq_len * dim * itemsize + half * 4,
    )

    cos, sin = pl.pallas_call(
        functools.partial(_rotary_tables_kernel, block_seq=block_seq, half=half),
        out_shape=(jax.ShapeDtypeStruct((seq_len, dim), out_dtype),
                   jax.ShapeDtypeStruct((seq_len, dim), out_dtype)),
        grid_spec=pltpu.PrefetchScalarGridSpec(
            num_scalar_prefetch=0,
            grid=grid,
            in_specs=[
                # half-width inv_freq: constant index_map -> resident in VMEM
                pl.BlockSpec((1, half), lambda i: (0, 0)),
            ],
            out_specs=[
                pl.BlockSpec((block_seq, dim), lambda i: (i, 0)),
                pl.BlockSpec((block_seq, dim), lambda i: (i, 0)),
            ],
        ),
        compiler_params=pltpu.CompilerParams(
            dimension_semantics=("parallel",),
            vmem_limit_bytes=vmem_limit,
        ),
        cost_estimate=cost,
    )(inv_freq_half)

    return (cos.reshape(1, 1, seq_len, dim),
            sin.reshape(1, 1, seq_len, dim))


def llama_rotary_embedding_ref(x, dim, max_position_embeddings=2048, base=10000.0):
    """Pure-JAX reference mirroring the PyTorch module."""
    inv_freq = 1.0 / (base ** (jnp.arange(0, dim, 2, dtype=jnp.float32) / dim))
    t = jnp.arange(max_position_embeddings, dtype=jnp.float32)
    freqs = jnp.einsum("i,j->ij", t, inv_freq)
    emb = jnp.concatenate([freqs, freqs], axis=-1)
    cos = jnp.cos(emb)[None, None, :, :].astype(x.dtype)
    sin = jnp.sin(emb)[None, None, :, :].astype(x.dtype)
    return cos, sin


if __name__ == "__main__":
    # Small shapes consistent with the module: x is (batch, heads, seq, head_dim);
    # forward only uses x.dtype, outputs are (1, 1, max_pos, head_dim).
    batch, num_heads, seq, head_dim = 2, 4, 8, 64
    max_pos = 128
    base = 10000.0

    key = jax.random.PRNGKey(0)
    x = jax.random.normal(key, (batch, num_heads, seq, head_dim), dtype=jnp.float32)

    cos, sin = llama_rotary_embedding(
        x, dim=head_dim, max_position_embeddings=max_pos, base=base)
    cos, sin = jax.block_until_ready((cos, sin))

    cos_ref, sin_ref = llama_rotary_embedding_ref(
        x, dim=head_dim, max_position_embeddings=max_pos, base=base)

    assert cos.shape == (1, 1, max_pos, head_dim) and cos.dtype == x.dtype
    assert sin.shape == (1, 1, max_pos, head_dim) and sin.dtype == x.dtype
    assert jnp.allclose(cos, cos_ref, atol=1e-4, rtol=1e-4), "cos mismatch vs reference"
    assert jnp.allclose(sin, sin_ref, atol=1e-4, rtol=1e-4), "sin mismatch vs reference"

    print("KERNEL_OK")
</pallas_src>

<mosaic_0001>
module attributes {stable_mosaic.version = 11 : i64} {
  func.func @_rotary_tables_kernel(%arg0: i32, %arg1: memref<1x32xf32, #tpu.memory_space<vmem>>, %arg2: memref<32x64xf32, #tpu.memory_space<vmem>>, %arg3: memref<32x64xf32, #tpu.memory_space<vmem>>) attributes {dimension_semantics = [#tpu.dimension_semantics<parallel>], iteration_bounds = array<i64: 4>, scalar_prefetch = 0 : i64, scratch_operands = 0 : i64, tpu.core_type = #tpu.core_type<tc>, window_params = [{pipeline_mode = #tpu.pipeline_mode<synchronous>, transform_indices = @transform_0, window_bounds = array<i64: 1, 32>}, {transform_indices = @transform_1, window_bounds = array<i64: 32, 64>}, {transform_indices = @transform_2, window_bounds = array<i64: 32, 64>}]} {
    %0 = tpu.iota {dimensions = array<i32: 0>} : vector<32x32xi32>
    %c32_i32 = arith.constant 32 : i32
    %1 = arith.muli %arg0, %c32_i32 : i32
    %2 = vector.broadcast %1 : i32 to vector<32x32xi32>
    %3 = arith.addi %0, %2 : vector<32x32xi32>
    %4 = arith.sitofp %3 : vector<32x32xi32> to vector<32x32xf32>
    %c0 = arith.constant 0 : index
    %c0_0 = arith.constant 0 : index
    %5 = vector.load %arg1[%c0, %c0_0] : memref<1x32xf32, #tpu.memory_space<vmem>>, vector<1x32xf32>
    %6 = vector.broadcast %5 : vector<1x32xf32> to vector<32x32xf32>
    %7 = arith.mulf %4, %6 : vector<32x32xf32>
    %8 = math.cos %7 : vector<32x32xf32>
    %9 = math.sin %7 : vector<32x32xf32>
    %c0_1 = arith.constant 0 : index
    %c0_2 = arith.constant 0 : index
    %10 = vector.load %arg2[%c0_1, %c0_2] : memref<32x64xf32, #tpu.memory_space<vmem>>, vector<32x32xf32>
    tpu.vector_store %arg2[%c0_1, %c0_2], %8 {strides = array<i32>} : memref<32x64xf32, #tpu.memory_space<vmem>>, vector<32x32xf32>,
    %c0_3 = arith.constant 0 : index
    %c32 = arith.constant 32 : index
    %11 = vector.load %arg2[%c0_3, %c32] : memref<32x64xf32, #tpu.memory_space<vmem>>, vector<32x32xf32>
    tpu.vector_store %arg2[%c0_3, %c32], %8 {strides = array<i32>} : memref<32x64xf32, #tpu.memory_space<vmem>>, vector<32x32xf32>,
    %c0_4 = arith.constant 0 : index
    %c0_5 = arith.constant 0 : index
    %12 = vector.load %arg3[%c0_4, %c0_5] : memref<32x64xf32, #tpu.memory_space<vmem>>, vector<32x32xf32>
    tpu.vector_store %arg3[%c0_4, %c0_5], %9 {strides = array<i32>} : memref<32x64xf32, #tpu.memory_space<vmem>>, vector<32x32xf32>,
    %c0_6 = arith.constant 0 : index
    %c32_7 = arith.constant 32 : index
    %13 = vector.load %arg3[%c0_6, %c32_7] : memref<32x64xf32, #tpu.memory_space<vmem>>, vector<32x32xf32>
    tpu.vector_store %arg3[%c0_6, %c32_7], %9 {strides = array<i32>} : memref<32x64xf32, #tpu.memory_space<vmem>>, vector<32x32xf32>,
    return
  }
  func.func @transform_0(%arg0: i32) -> (i32, i32) {
    %c0_i32 = arith.constant 0 : i32
    %c0_i32_0 = arith.constant 0 : i32
    %c0_i32_1 = arith.constant 0 : i32
    return %c0_i32, %c0_i32_0 : i32, i32
  }
  func.func @transform_1(%arg0: i32) -> (i32, i32) {
    %c0_i32 = arith.constant 0 : i32
    %c0_i32_0 = arith.constant 0 : i32
    return %arg0, %c0_i32 : i32, i32
  }
  func.func @transform_2(%arg0: i32) -> (i32, i32) {
    %c0_i32 = arith.constant 0 : i32
    %c0_i32_0 = arith.constant 0 : i32
    return %arg0, %c0_i32 : i32, i32
  }
}

</mosaic_0001>

<bundles_post_ra>
// kernel: tpu_custom_call.1
= control target key start
LH: loop header
LB: loop body
LE: loop exit
PB: predicated region body
PF: predicated region fallthrough
CT: control target
= control target key end

     0   :  { %8 = vsyncpa [#allocation3], 0  ;;  %s1311_s9 = smov 0   ;;  %s1745_s0 = inlined_call_operand.hbm [shape: f32[1,32], index: 0, kind: input, shape index: {}]   ;;  %s1746_s1 = inlined_call_operand.vmem [shape: f32[128,64], index: 1, kind: output, shape index: {0}]   ;;  %s1747_s2 = inlined_call_operand.vmem [shape: f32[128,64], index: 2, kind: output, shape index: {1}]  }
   0x1 LB: > { %s1317_s10 = sadd.s32 4294967295, %s1286_s9   ;;  %p1148_p0 = scmp.ge.s32.totalorder %s1286_s9, 1  ;;  %s1286_s9 = sphi %s1311_s9, %s14_s9  }
   0x2   : > { %p92_p1 = scmp.lt.s32.totalorder %s1286_s9, 5  ;;  %p1216_p3 = scmp.eq.s32.totalorder %s1317_s10, 0 }
   0x3   : > { %s1288_s12 = smov [#allocation2]  }
   0x4   : > { %p1321_p2 = pnand %p1148_p0, %p92_p1  ;;  %s105_s13 = sshll.u32 %s1288_s12, 4  ;;  %s106_s13 = int_to_ptr.vmem [resolvable:$true] %s105_s13 }
   0x5   : > { %s1261_s14 = scalar_lea.vmem %s106_s13, 16  ;;  %s1268_s15 = scalar_lea.vmem %s106_s13, 32 }
   0x6   : > { %p1212_p4 = pneg %p1321_p2  ;;  %p1262_p7 = scmp.ne.s32.totalorder %s106_s13, %s1261_s14 }
   0x7   : > { %p1269_p10 = scmp.lt.s32.totalorder %s106_s13, %s106_s13  ;;  %p1270_p11 = scmp.lt.s32.totalorder %s1268_s15, %s1261_s14 }
   0x8   : > { %p1213_p5 = pnand %p1216_p3, %p1212_p4 }
   0x9   : > { %p1271_p12 = por %p1270_p11, %p1269_p10 }
   0xa   : > { %p1252_p6 = pneg %p1213_p5 }
   0xc   : > { %p1264_p8 = pnand %p1262_p7, %p1252_p6 }
   0xe   : > { %p1265_p9 = pneg %p1264_p8 }
  0x10   : > { %p1272_p13 = pnand %p1271_p12, %p1265_p9 }
  0x12   : > { %1275 = shalt.err (!%p1272_p13)
}
  0x13   : > { %1215 = dma.hbm_to_vmem [thread:$0]  (!%p1213_p5), %s1745_s0, 16, %s106_s13, [#allocation3]  }
  0x14   : > { %118 = sbr.rel (%p1321_p2) target bundleno = 298 (0x12a), region = 24 }
  0x19   : > { %1281 = dma.done.wait (%p1216_p3), [#allocation3], 16  }
  0x1a   : > { %1283 = vsyncadd (%p1216_p3), [#allocation3], 4294967280  ;;  %v152_v0 = vlaneseq  ;;  %s1156_s18 = sshll.u32 %s1317_s10, 5  ;;  %v1340_v9 = vld [vmem:[#allocation2] ss:$0 sm:$0xff]  ;;  %s1152_s19 = sshll.u32 %s1317_s10, 2 }
  0x1b   : > { %v158_v1 = vstv %s1156_s18  ;;  %v1289_v45 = vmov 683565275   ;;  %v1290_v47 = vmov 2475754826   ;;  %v1291_v52 = vmov 2131351028  }
  0x1c   : > { %v153_v2 = vshrl.u32 %v152_v0, 7  ;;  %v1292_v54 = vmov 2102212464   ;;  %v1293_v56 = vmov 920167782   ;;  %p1585_p0 = scmp.lt.s32.totalorder %s1152_s19, 15 }
  0x1d   : > { %v1294_v0 = vmov 1326507024   ;;  %s1295_s25 = smov 32  }
  0x1e   : > { %v155_v3 = vadd.s32 16, %v153_v2  ;;  %v159_v4 = vadd.s32 %v158_v1, %v153_v2  ;;  %v156_v5 = vadd.s32 24, %v153_v2  ;;  %v154_v27 = vadd.s32 8, %v153_v2  ;;  %s1757_s19 = smov (!%p1585_p0, %s1152_s19), 15 }
  0x1f   : > { %s1153_s21 = sshll.u32 %s1757_s19, 3 }
  0x20   : > { %v161_v6 = vadd.s32 %v158_v1, %v155_v3  ;;  %v163_v7 = vcvt.s32.f32 %v159_v4  ;;  %v162_v8 = vadd.s32 %v158_v1, %v156_v5  ;;  %v1360_v34 = vadd.s32 %v158_v1, %v154_v27  ;;  %s1637_s24 = scalar_lea.vmem %s1746_s1, %s1153_s21  ;;  %s1660_s28 = scalar_lea.vmem %s1747_s2, %s1153_s21 }
  0x22   : > { %v165_v10 = vcvt.s32.f32 %v161_v6  ;;  %v1343_v11 = vmul.f32 %v1340_v9, %v163_v7  ;;  %v166_v12 = vcvt.s32.f32 %v162_v8 }
  0x24   : > { %v1346_v13 = vmul.f32 %v1340_v9, %v165_v10  ;;  %v178_v14 = vand.u32 2147483647, %v1343_v11  ;;  %v181_v15 = vand.u32 2139095040, %v1343_v11  ;;  %v1351_v16 = vmul.f32 %v1340_v9, %v166_v12 }
  0x26   : > { %v384_v17 = vand.u32 2147483647, %v1346_v13  ;;  %v387_v18 = vand.u32 2139095040, %v1346_v13  ;;  %v182_v19 = vshrl.u32 %v181_v15, 23  ;;  %v185_v20 = vand.u32 8388607, %v178_v14 }
  0x27   : > { %v490_v23 = vand.u32 2139095040, %v1351_v16  ;;  %v487_v38 = vand.u32 2147483647, %v1351_v16 }
  0x28   : > { %v388_v21 = vshrl.u32 %v387_v18, 23  ;;  %v391_v22 = vand.u32 8388607, %v384_v17  ;;  %v1158_v24 = vadd.s32 4294967169, %v182_v19  ;;  %v186_v28 = vor.u32 8388608, %v185_v20 }
  0x29   : > { %v491_v26 = vshrl.u32 %v490_v23, 23 }
  0x2a   : > { %v1166_v25 = vadd.s32 4294967169, %v388_v21  ;;  %v188_v29 = vadd.s32 1, %v1158_v24  ;;  %v392_v30 = vor.u32 8388608, %v391_v22  ;;  %v1362_v37 = vshll.u32 %v186_v28, 8 }
  0x2b   : > { %v1170_v32 = vadd.s32 4294967169, %v491_v26 }
  0x2c   : > { %v394_v31 = vadd.s32 1, %v1166_v25  ;;  %vm189_vm0 = vcmp.gt.s32.totalorder %v188_v29, 0  ;;  %v1365_v41 = vshll.u32 %v392_v30, 8 }
  0x2d   : > { %v190_v33 = vsel %vm189_vm0, %v188_v29, 0  ;;  %v1367_v42 = vadd.s32 1, %v1170_v32 }
  0x2e   : > { %vm395_vm1 = vcmp.gt.s32.totalorder %v394_v31, 0  ;;  %v192_v36 = vand.u32 31, %v190_v33  ;;  %v1369_v43 = vshrl.u32 %v190_v33, 5 }
  0x2f   : > { %v396_v35 = vsel %vm395_vm1, %v394_v31, 0  ;;  %vm498_vm7 = vcmp.gt.s32.totalorder %v1367_v42, 0 }
  0x30   : > { %v397_v39 = vshrl.u32 %v396_v35, 5  ;;  %v398_v40 = vand.u32 31, %v396_v35  ;;  %v193_v44 = vsub.s32 32, %v192_v36  ;;  %v195_v46 = vshll.u32 %v1289_v45, %v192_v36 }
  0x31   : > { %v198_v48 = vshll.u32 %v1290_v47, %v192_v36  ;;  %v201_v58 = vshll.u32 %v1291_v52, %v192_v36  ;;  %vm210_vm6 = vcmp.lt.s32.totalorder %v1369_v43, 1  ;;  %vm211_vm8 = vcmp.lt.s32.totalorder %v1369_v43, 2 }
  0x32   : > { %v399_v49 = vsub.s32 32, %v398_v40  ;;  %v401_v50 = vshll.u32 %v1289_v45, %v398_v40  ;;  %v404_v51 = vshll.u32 %v1290_v47, %v398_v40  ;;  %v407_v53 = vshll.u32 %v1291_v52, %v398_v40 }
  0x33   : > { %v410_v55 = vshll.u32 %v1292_v54, %v398_v40  ;;  %v413_v57 = vshll.u32 %v1293_v56, %v398_v40  ;;  %vm416_vm2 = vcmp.lt.s32.totalorder %v397_v39, 1  ;;  %vm417_vm3 = vcmp.lt.s32.totalorder %v397_v39, 2 }
  0x34   : > { %v400_v59 = vshrl.u32 %v1289_v45, %v399_v49  ;;  %v402_v60 = vshrl.u32 %v1290_v47, %v399_v49  ;;  %v405_v61 = vshrl.u32 %v1291_v52, %v399_v49  ;;  %v408_v62 = vshrl.u32 %v1292_v54, %v399_v49 }
  0x35   : > { %v411_v63 = vshrl.u32 %v1293_v56, %v399_v49  ;;  %v414_v1 = vshrl.u32 %v1294_v0, %v399_v49  ;;  %vm418_vm4 = vcmp.lt.s32.totalorder %v397_v39, 3  ;;  %vm419_vm5 = vcmp.lt.s32.totalorder %v397_v39, 4 }
  0x36   : > { %v403_v2 = vor.u32 %v402_v60, %v401_v50  ;;  %v406_v3 = vor.u32 %v405_v61, %v404_v51  ;;  %v409_v4 = vor.u32 %v408_v62, %v407_v53  ;;  %v196_v7 = vshrl.u32 %v1290_v47, %v193_v44 }
  0x37   : > { %v412_v5 = vor.u32 %v411_v63, %v410_v55  ;;  %v415_v6 = vor.u32 %v414_v1, %v413_v57  ;;  %v199_v8 = vshrl.u32 %v1291_v52, %v193_v44  ;;  %v194_v22 = vshrl.u32 %v1289_v45, %v193_v44 }
  0x38   : > { %v420_v10 = vsel %vm416_vm2, %v400_v59, %v403_v2  ;;  %v421_v12 = vsel %vm419_vm5, %v409_v4, 2102212464  ;;  %v424_v15 = vsel %vm416_vm2, %v403_v2, %v406_v3  ;;  %v428_v18 = vsel %vm416_vm2, %v406_v3, %v409_v4 }
  0x39   : > { %v422_v19 = vsel %vm418_vm4, %v406_v3, %v421_v12  ;;  %v425_v20 = vsel %vm419_vm5, %v412_v5, 920167782  ;;  %v429_v21 = vsel %vm419_vm5, %v415_v6, 1326507024  ;;  %v197_v26 = vor.u32 %v196_v7, %v195_v46 }
  0x3a   : > { %v423_v23 = vsel %vm417_vm3, %v420_v10, %v422_v19  ;;  %v426_v24 = vsel %vm418_vm4, %v409_v4, %v425_v20  ;;  %v430_v25 = vsel %vm418_vm4, %v412_v5, %v429_v21  ;;  %v200_v29 = vor.u32 %v199_v8, %v198_v48 }
  0x3b   : > { %v427_v27 = vsel %vm417_vm3, %v424_v15, %v426_v24  ;;  %v431_v28 = vsel %vm417_vm3, %v428_v18, %v430_v25  ;;  %v202_v30 = vshrl.u32 %v1292_v54, %v193_v44  ;;  %v204_v49 = vshll.u32 %v1292_v54, %v192_v36 }
  0x3c   : > { %v1399_v31 = vmul.u32.u64.low %v1365_v41, %v431_v28  ;;  %v1400_v32 = vmul.u32.u64.high %v1365_v41, %v431_v28, %v1399_v31  ;;  %v1403_v33 = vmul.u32.u64.low %v1365_v41, %v427_v27  ;;  %v1404_v35 = vmul.u32.u64.high %v1365_v41, %v427_v27, %v1403_v33 }
  0x3d   : > { %v203_v40 = vor.u32 %v202_v30, %v201_v58  ;;  %v205_v46 = vshrl.u32 %v1293_v56, %v193_v44  ;;  %v207_v39 = vshll.u32 %v1293_v56, %v192_v36  ;;  %v439_v48 = vmul.u32 %v1365_v41, %v423_v23 }
  0x3e   : > { %v208_v50 = vshrl.u32 %v1294_v0, %v193_v44  ;;  %vm212_vm9 = vcmp.lt.s32.totalorder %v1369_v43, 3  ;;  %vm213_vm10 = vcmp.lt.s32.totalorder %v1369_v43, 4  ;;  %vm441_vm11 = vc.u32 %v1400_v32, %v1403_v33 }
  0x3f   : > { %v206_v51 = vor.u32 %v205_v46, %v204_v49  ;;  %v442_v36 = vadd.s32 1, %v1404_v35  ;;  %v218_v41 = vsel %vm210_vm6, %v197_v26, %v200_v29  ;;  %v214_v55 = vsel %vm210_vm6, %v194_v22, %v197_v26 }
  0x40   : > { %v209_v53 = vor.u32 %v208_v50, %v207_v39  ;;  %v215_v44 = vsel %vm213_vm10, %v203_v40, 2102212464  ;;  %v222_v58 = vsel %vm210_vm6, %v200_v29, %v203_v40  ;;  %v499_v3 = vsel %vm498_vm7, %v1367_v42, 0 }
  0x41   : > { %v219_v57 = vsel %vm213_vm10, %v206_v51, 920167782  ;;  %v443_v59 = vsel %vm441_vm11, %v442_v36, %v1404_v35  ;;  %v216_v60 = vsel %vm212_vm9, %v200_v29, %v215_v44  ;;  %v164_v15 = vcvt.s32.f32 %v1360_v34 }
  0x42   : > { %v220_v61 = vsel %vm212_vm9, %v203_v40, %v219_v57  ;;  %v223_v62 = vsel %vm213_vm10, %v209_v53, 1326507024  ;;  %v444_v63 = vadd.s32 %v443_v59, %v439_v48  ;;  %v217_v4 = vsel %vm211_vm8, %v214_v55, %v216_v60 }
  0x43   : > { %v221_v1 = vsel %vm211_vm8, %v218_v41, %v220_v61  ;;  %v224_v2 = vsel %vm212_vm9, %v206_v51, %v223_v62  ;;  %v501_v18 = vand.u32 31, %v499_v3  ;;  %v233_v19 = vmul.u32 %v1362_v37, %v217_v4 }
  0x44   : > { %v225_v5 = vsel %vm211_vm8, %v222_v58, %v224_v2  ;;  %v1437_v6 = vmul.u32.u64.low %v1362_v37, %v221_v1  ;;  %v1438_v7 = vmul.u32.u64.high %v1362_v37, %v221_v1, %v1437_v6  ;;  %v445_v8 = vadd.s32 536870912, %v444_v63 }
  0x45   : > { %v1442_v10 = vmul.u32.u64.low %v1362_v37, %v225_v5  ;;  %v1443_v12 = vmul.u32.u64.high %v1362_v37, %v225_v5, %v1442_v10  ;;  %v494_v20 = vand.u32 8388607, %v487_v38  ;;  %v502_v21 = vsub.s32 32, %v501_v18 }
  0x46   : > { %v1446_v42 = vshrl.u32 %v445_v8, 30  ;;  %v236_v43 = vadd.s32 1, %v1438_v7  ;;  %v1455_v23 = vshrl.u32 %v499_v3, 5  ;;  %v1458_v34 = vmul.f32 %v1340_v9, %v164_v15 }
  0x47   : > { %vm235_vm12 = vc.u32 %v1443_v12, %v1437_v6  ;;  %v504_v37 = vshll.u32 %v1289_v45, %v501_v18  ;;  %v505_v25 = vshrl.u32 %v1290_v47, %v502_v21  ;;  %v507_v26 = vshll.u32 %v1290_v47, %v501_v18 }
  0x48   : > { %v447_v22 = vshll.u32 %v1446_v42, 30  ;;  %v237_v24 = vsel %vm235_vm12, %v236_v43, %v1438_v7  ;;  %v508_v29 = vshrl.u32 %v1291_v52, %v502_v21  ;;  %v510_v30 = vshll.u32 %v1291_v52, %v501_v18 }
  0x49   : > { %v238_v28 = vadd.s32 %v237_v24, %v233_v19  ;;  %v495_v31 = vor.u32 8388608, %v494_v20  ;;  %v511_v35 = vshrl.u32 %v1292_v54, %v502_v21  ;;  %v513_v49 = vshll.u32 %v1292_v54, %v501_v18 }
  0x4a   : > { %v448_v27 = vsub.s32 %v444_v63, %v447_v22  ;;  %v284_v46 = vand.u32 2139095040, %v1458_v34  ;;  %v514_v39 = vshrl.u32 %v1293_v56, %v502_v21  ;;  %v516_v48 = vshll.u32 %v1293_v56, %v501_v18 }
  0x4b   : > { %v239_v9 = vadd.s32 536870912, %v238_v28  ;;  %v517_v50 = vshrl.u32 %v1294_v0, %v502_v21  ;;  %vm519_vm13 = vcmp.lt.s32.totalorder %v1455_v23, 1  ;;  %v506_v36 = vor.u32 %v505_v25, %v504_v37 }
  0x4c   : > { %v450_v40 = vsub.s32 0, %v448_v27  ;;  %v509_v53 = vor.u32 %v508_v29, %v507_v26  ;;  %v512_v41 = vor.u32 %v511_v35, %v510_v30  ;;  %v515_v44 = vor.u32 %v514_v39, %v513_v49 }
  0x4d   : > { %v1473_v55 = vshrl.u32 %v239_v9, 30  ;;  %v518_v57 = vor.u32 %v517_v50, %v516_v48  ;;  %vm522_vm14 = vcmp.lt.s32.totalorder %v1455_v23, 4  ;;  %v503_v59 = vshrl.u32 %v1289_v45, %v502_v21 }
  0x4e   : > { %v1167_v51 = vmin.u32 %v450_v40, %v448_v27  ;;  %vm521_vm15 = vcmp.lt.s32.totalorder %v1455_v23, 3  ;;  %v285_v60 = vshrl.u32 %v284_v46, 23  ;;  %v440_v61 = vadd.s32 %v1403_v33, %v1400_v32 }
  0x4f   : > { %v241_v62 = vshll.u32 %v1473_v55, 30  ;;  %v528_v63 = vsel %vm522_vm14, %v515_v44, 920167782  ;;  %v535_v1 = vshll.u32 %v495_v31, 8  ;;  %vm520_vm0 = vcmp.lt.s32.totalorder %v1455_v23, 2 }
  0x50   : > { %v452_v58 = vclz %v1167_v51  ;;  %v524_v3 = vsel %vm522_vm14, %v512_v41, 2102212464  ;;  %v531_v4 = vsel %vm519_vm13, %v509_v53, %v512_v41  ;;  %v527_v32 = vsel %vm519_vm13, %v506_v36, %v509_v53 }
  0x51   : > { %v1488_v5 = vsub.s32 %v238_v28, %v241_v62  ;;  %v529_v33 = vsel %vm521_vm15, %v512_v41, %v528_v63  ;;  %v532_v7 = vsel %vm522_vm14, %v518_v57, 1326507024  ;;  %v523_v8 = vsel %vm519_vm13, %v503_v59, %v506_v36 }
  0x52   : > { %v1168_v2 = vadd.s32 4294967294, %v452_v58  ;;  %v533_v10 = vsel %vm521_vm15, %v515_v44, %v532_v7  ;;  %v1162_v15 = vadd.s32 4294967169, %v285_v60  ;;  %v525_v43 = vsel %vm521_vm15, %v509_v53, %v524_v3 }
  0x53   : > { %v244_v19 = vsub.s32 0, %v1488_v5  ;;  %v534_v20 = vsel %vm520_vm0, %v531_v4, %v533_v10  ;;  %v530_v37 = vsel %vm520_vm0, %v527_v32, %v529_v33  ;;  %vm386_vm2 = vcmp.lt.s32.totalorder %v1346_v13, 0 }
  0x54   : > { %vm1169_vm1 = vcmp.lt.s32.totalorder %v1168_v2, 0  ;;  %v470_v25 = vsub.s32 4, %v1446_v42  ;;  %vm180_vm3 = vcmp.lt.s32.totalorder %v1343_v11, 0  ;;  %v281_v39 = vand.u32 2147483647, %v1458_v34 }
  0x55   : > { %v455_v18 = vsel %vm1169_vm1, 0, %v1168_v2  ;;  %v1159_v26 = vmin.u32 %v244_v19, %v1488_v5  ;;  %v1511_v30 = vmul.u32.u64.low %v535_v1, %v534_v20  ;;  %v1512_v31 = vmul.u32.u64.high %v535_v1, %v534_v20, %v1511_v30 }
  0x56   : > { %v456_v21 = vsub.s32 32, %v455_v18  ;;  %v457_v22 = vshll.u32 %v448_v27, %v455_v18  ;;  %v460_v24 = vsub.s32 4294967266, %v455_v18  ;;  %v526_v27 = vsel %vm520_vm0, %v523_v8, %v525_v43 }
  0x57   : > { %v246_v35 = vclz %v1159_v26  ;;  %v1516_v40 = vmul.u32.u64.low %v535_v1, %v530_v37  ;;  %v1517_v9 = vmul.u32.u64.high %v535_v1, %v530_v37, %v1516_v40  ;;  %v291_v48 = vadd.s32 1, %v1162_v15 }
  0x58   : > { %v458_v28 = vshrl.u32 %v440_v61, %v456_v21  ;;  %v461_v29 = vadd.s32 127, %v460_v24  ;;  %vm1523_vm4 = vcmp.le.f32.partialorder %v384_v17, 0.7853982  ;;  %v471_v23 = vsel %vm386_vm2, %v470_v25, %v1446_v42 }
  0x59   : > { %v234_v51 = vadd.s32 %v1437_v6, %v1443_v12  ;;  %v1160_v36 = vadd.s32 4294967294, %v246_v35  ;;  %v542_v44 = vmul.u32 %v535_v1, %v526_v27  ;;  %vm544_vm5 = vc.u32 %v1512_v31, %v1516_v40 }
  0x5a   : > { %v459_v49 = vor.u32 %v458_v28, %v457_v22  ;;  %v462_v46 = vshll.u32 %v461_v29, 23  ;;  %v264_v17 = vsub.s32 4, %v1473_v55  ;;  %v545_v57 = vadd.s32 1, %v1517_v9 }
  0x5b   : > { %vm1161_vm6 = vcmp.lt.s32.totalorder %v1160_v36, 0  ;;  %vm292_vm7 = vcmp.gt.s32.totalorder %v291_v48, 0  ;;  %v288_v42 = vand.u32 8388607, %v281_v39  ;;  %v473_v1 = vsel %vm1523_vm4, 0, %v471_v23 }
  0x5c   : > { %v463_v53 = vor.u32 4788187, %v462_v46  ;;  %v466_v41 = vcvt.s32.f32 %v459_v49  ;;  %v249_v59 = vsel %vm1161_vm6, 0, %v1160_v36  ;;  %v293_v60 = vsel %vm292_vm7, %v291_v48, 0 }
  0x5d   : > { %v250_v6 = vsub.s32 32, %v249_v59  ;;  %v251_v12 = vshll.u32 %v1488_v5, %v249_v59  ;;  %v254_v61 = vsub.s32 4294967266, %v249_v59  ;;  %v546_v62 = vsel %vm544_vm5, %v545_v57, %v1517_v9 }
  0x5e   : > { %v464_v58 = vand.u32 2147483647, %v463_v53  ;;  %v547_v2 = vadd.s32 %v546_v62, %v542_v44  ;;  %v295_v3 = vand.u32 31, %v293_v60  ;;  %v265_v33 = vsel %vm180_vm3, %v264_v17, %v1473_v55 }
  0x5f   : > { %v252_v4 = vshrl.u32 %v234_v51, %v250_v6  ;;  %v255_v32 = vadd.s32 127, %v254_v61  ;;  %vm1547_vm8 = vcmp.le.f32.partialorder %v178_v14, 0.7853982  ;;  %v1551_v15 = vand.u32 3, %v473_v1 }
  0x60   : > { %v467_v63 = vmul.f32 %v466_v41, %v464_v58  ;;  %v548_v8 = vadd.s32 536870912, %v547_v2  ;;  %v296_v10 = vsub.s32 32, %v295_v3  ;;  %v289_v43 = vor.u32 8388608, %v288_v42 }
  0x61   : > { %v253_v18 = vor.u32 %v252_v4, %v251_v12  ;;  %v256_v19 = vshll.u32 %v255_v32, 23  ;;  %v267_v55 = vsel %vm1547_vm8, 0, %v265_v33  ;;  %v298_v14 = vshll.u32 %v1289_v45, %v295_v3 }
  0x62   : > { %v468_v7 = vxor.u32 2147483648, %v467_v63  ;;  %v1557_v21 = vshrl.u32 %v548_v8, 30  ;;  %v301_v25 = vshll.u32 %v1290_v47, %v295_v3  ;;  %v299_v28 = vshrl.u32 %v1290_v47, %v296_v10 }
  0x63   : > { %v257_v24 = vor.u32 4788187, %v256_v19  ;;  %v260_v37 = vcvt.s32.f32 %v253_v18  ;;  %v302_v29 = vshrl.u32 %v1291_v52, %v296_v10  ;;  %v294_v35 = vshrl.u32 %v293_v60, 5 }
  0x64   : > { %v469_v20 = vsel %vm386_vm2, %v468_v7, %v467_v63  ;;  %v550_v26 = vshll.u32 %v1557_v21, 30  ;;  %v304_v27 = vshll.u32 %v1291_v52, %v295_v3  ;;  %v305_v49 = vshrl.u32 %v1292_v54, %v296_v10 }
  0x65   : > { %v472_v22 = vsel %vm1523_vm4, %v1346_v13, %v469_v20  ;;  %v258_v30 = vand.u32 2147483647, %v257_v24  ;;  %v307_v46 = vshll.u32 %v1292_v54, %v295_v3  ;;  %v308_v48 = vshrl.u32 %v1293_v56, %v296_v10 }
  0x66   : > { %1234 = vcosq.f32 %v472_v22  ;;  %v1568_v9 = vsub.s32 %v547_v2, %v550_v26  ;;  %v1574_v23 = vand.u32 3, %v267_v55  ;;  %v310_v47 = vshll.u32 %v1293_v56, %v295_v3 }
  0x67   : > { %1236 = vsinq.f32 %v472_v22  ;;  %v261_v50 = vmul.f32 %v260_v37, %v258_v30  ;;  %v1577_v51 = vshll.u32 %v289_v43, 8  ;;  %v300_v52 = vor.u32 %v299_v28, %v298_v14 }
  0x68   : > { %v553_v36 = vsub.s32 0, %v1568_v9  ;;  %v303_v53 = vor.u32 %v302_v29, %v301_v25  ;;  %v311_v41 = vshrl.u32 %v1294_v0, %v296_v10  ;;  %vm482_vm9 = vcmp.eq.s32.totalorder %v1551_v15, 2 }
  0x69   : > { %v262_v54 = vxor.u32 2147483648, %v261_v50  ;;  %v297_v44 = vshrl.u32 %v1289_v45, %v296_v10  ;;  %v309_v17 = vor.u32 %v308_v48, %v307_v46  ;;  %vm313_vm10 = vcmp.lt.s32.totalorder %v294_v35, 1 }
  0x6a   : > { %vm479_vm11 = vcmp.eq.s32.totalorder %v1551_v15, 0  ;;  %v1171_v56 = vmin.u32 %v553_v36, %v1568_v9  ;;  %v306_v57 = vor.u32 %v305_v49, %v304_v27  ;;  %vm314_vm12 = vcmp.lt.s32.totalorder %v294_v35, 2 }
  0x6b   : > { %v891_v58 = vadd.s32 3, %v473_v1  ;;  %vm478_vm13 = vcmp.lt.s32.totalorder %v1551_v15, 2  ;;  %v263_v45 = vsel %vm180_vm3, %v262_v54, %v261_v50  ;;  %v312_v0 = vor.u32 %v311_v41, %v310_v47 }
  0x6c   : > { %vm315_vm14 = vcmp.lt.s32.totalorder %v294_v35, 3  ;;  %vm316_vm15 = vcmp.lt.s32.totalorder %v294_v35, 4  ;;  %vm476_vm0 = vweird.f32 %v1346_v13  ;;  %v266_v59 = vsel %vm1547_vm8, %v1343_v11, %v263_v45 }
  0x6d   : > { %v555_v42 = vclz %v1171_v56  ;;  %v318_v60 = vsel %vm316_vm15, %v306_v57, 2102212464  ;;  %v321_v6 = vsel %vm313_vm10, %v300_v52, %v303_v53  ;;  %vm1006_vm1 = vcmask 261120  }
  0x6e   : > { %1238 = vcosq.f32 %v266_v59  ;;  %v317_v12 = vsel %vm313_vm10, %v297_v44, %v300_v52  ;;  %v319_v61 = vsel %vm315_vm14, %v303_v53, %v318_v60  ;;  %v322_v62 = vsel %vm316_vm15, %v309_v17, 920167782 }
  0x6f   : > { %1240 = vsinq.f32 %v266_v59  ;;  %v1172_v63 = vadd.s32 4294967294, %v555_v42  ;;  %v323_v1 = vsel %vm315_vm14, %v306_v57, %v322_v62  ;;  %v325_v2 = vsel %vm313_vm10, %v303_v53, %v306_v57 }
  0x70   : > { %v543_v3 = vadd.s32 %v1516_v40, %v1512_v31  ;;  %v683_v4 = vadd.s32 3, %v267_v55  ;;  %v324_v32 = vsel %vm314_vm12, %v321_v6, %v323_v1  ;;  %v326_v33 = vsel %vm316_vm15, %v312_v0, 1326507024 }
  0x71   : > { %vm1173_vm2 = vcmp.lt.s32.totalorder %v1172_v63, 0  ;;  %v327_v7 = vsel %vm315_vm14, %v309_v17, %v326_v33  ;;  %v1617_v5 = vmul.u32.u64.low %v1577_v51, %v324_v32  ;;  %v1618_v8 = vmul.u32.u64.high %v1577_v51, %v324_v32, %v1617_v5 }
  0x72   : > { %v558_v18 = vsel %vm1173_vm2, 0, %v1172_v63  ;;  %v320_v19 = vsel %vm314_vm12, %v317_v12, %v319_v61  ;;  %v328_v31 = vsel %vm314_vm12, %v325_v2, %v327_v7  ;;  %v892_v40 = vand.u32 3, %v891_v58 }
  0x73   : > { %v1235_v10 = vpop.eup %1234  ;;  %v559_v55 = vsub.s32 32, %v558_v18  ;;  %v560_v14 = vshll.u32 %v1568_v9, %v558_v18  ;;  %v563_v22 = vsub.s32 4294967266, %v558_v18  ;;  %v684_v37 = vand.u32 3, %v683_v4 }
  0x74   : > { %v1237_v43 = vpop.eup %1236  ;;  %v483_v20 = vxor.u32 2147483648, %v1235_v10  ;;  %v1626_v25 = vmul.u32.u64.low %v1577_v51, %v328_v31  ;;  %v1627_v26 = vmul.u32.u64.high %v1577_v51, %v328_v31, %v1626_v25  ;;  %v339_v35 = vadd.s32 1, %v1618_v8 }
  0x75   : > { %v480_v24 = vxor.u32 2147483648, %v1237_v43  ;;  %v561_v29 = vshrl.u32 %v543_v3, %v559_v55  ;;  %v564_v30 = vadd.s32 127, %v563_v22  ;;  %v336_v9 = vmul.u32 %v1577_v51, %v320_v19 }
  0x76   : > { %v484_v28 = vsel %vm482_vm9, %v483_v20, %v1237_v43  ;;  %vm893_vm3 = vcmp.lt.s32.totalorder %v892_v40, 2  ;;  %vm894_vm4 = vcmp.eq.s32.totalorder %v892_v40, 0  ;;  %vm338_vm5 = vc.u32 %v1627_v26, %v1617_v5 }
  0x77   : > { %v481_v27 = vsel %vm479_vm11, %v1235_v10, %v480_v24  ;;  %v562_v46 = vor.u32 %v561_v29, %v560_v14  ;;  %v565_v48 = vshll.u32 %v564_v30, 23  ;;  %v896_v50 = vsel %vm894_vm4, %v1235_v10, %v480_v24 }
  0x78   : > { %v485_v49 = vsel %vm478_vm13, %v481_v27, %v484_v28  ;;  %vm897_vm6 = vcmp.eq.s32.totalorder %v892_v40, 2  ;;  %v340_v15 = vsel %vm338_vm5, %v339_v35, %v1618_v8  ;;  %vm270_vm7 = vweird.f32 %v1343_v11 }
  0x79   : > { %v486_v47 = vsel %vm476_vm0, nan, %v485_v49  ;;  %v566_v51 = vor.u32 4788187, %v565_v48  ;;  %v569_v36 = vcvt.s32.f32 %v562_v46  ;;  %v899_v52 = vsel %vm897_vm6, %v483_v20, %v1237_v43 }
  0x7a   : > { %1019 = vrot.lane.b32.xlu1 %v486_v47, %s1295_s25  ;;  %1009 = vst.msk [vmem:[%s1637_s24 + $0x10] sm:$0xff] %vm1006_vm1, %v486_v47  ;;  %v341_v53 = vadd.s32 %v340_v15, %v336_v9  ;;  %v900_v41 = vsel %vm893_vm3, %v896_v50, %v899_v52  ;;  %vm276_vm8 = vcmp.eq.s32.totalorder %v1574_v23, 2  ;;  %vm689_vm9 = vcmp.eq.s32.totalorder %v684_v37, 2 }
  0x7b   : > { %v1239_v54 = vpop.eup %1238  ;;  %v567_v44 = vand.u32 2147483647, %v566_v51  ;;  %v1664_v17 = vsel %vm476_vm0, nan, %v900_v41  ;;  %vm273_vm10 = vcmp.eq.s32.totalorder %v1574_v23, 0  ;;  %vm686_vm11 = vcmp.eq.s32.totalorder %v684_v37, 0 }
  0x7c   : > { %v1241_v56 = vpop.eup %1240  ;;  %v277_v57 = vxor.u32 2147483648, %v1239_v54  ;;  %v342_v58 = vadd.s32 536870912, %v341_v53  ;;  %1034 = vst.msk [vmem:[%s1660_s28 + $0x10] sm:$0xff] %vm1006_vm1, %v1664_v17  ;;  %vm272_vm12 = vcmp.lt.s32.totalorder %v1574_v23, 2  ;;  %vm685_vm13 = vcmp.lt.s32.totalorder %v684_v37, 2 }
  0x7d   : > { %v274_v45 = vxor.u32 2147483648, %v1241_v56  ;;  %v570_v0 = vmul.f32 %v569_v36, %v567_v44  ;;  %vm489_vm14 = vcmp.lt.s32.totalorder %v1351_v16, 0  ;;  %vm1676_vm15 = vcmp.le.f32.partialorder %v487_v38, 0.7853982 }
  0x7e   : > { %v278_v59 = vsel %vm276_vm8, %v277_v57, %v1241_v56  ;;  %v691_v13 = vsel %vm689_vm9, %v277_v57, %v1241_v56  ;;  %v1672_v42 = vshrl.u32 %v342_v58, 30  ;;  %v573_v62 = vsub.s32 4, %v1557_v21 }
  0x7f   : > { %v275_v60 = vsel %vm273_vm10, %v1239_v54, %v274_v45  ;;  %v571_v12 = vxor.u32 2147483648, %v570_v0  ;;  %v688_v23 = vsel %vm686_vm11, %v1239_v54, %v274_v45  ;;  %v337_v40 = vadd.s32 %v1617_v5, %v1627_v26 }
  0x80   : > { %v279_v61 = vsel %vm272_vm12, %v275_v60, %v278_v59  ;;  %v692_v63 = vsel %vm685_vm13, %v688_v23, %v691_v13  ;;  %v344_v1 = vshll.u32 %v1672_v42, 30  ;;  %v574_v33 = vsel %vm489_vm14, %v573_v62, %v1557_v21 }
  0x81   : > { %v280_v2 = vsel %vm270_vm7, nan, %v279_v61  ;;  %v572_v3 = vsel %vm489_vm14, %v571_v12, %v570_v0  ;;  %v693_v38 = vsel %vm270_vm7, nan, %v692_v63  ;;  %v576_v8 = vsel %vm1676_vm15, 0, %v574_v33 }
  0x82   : > { %1015 = vrot.lane.b32.xlu0 %v280_v2, %s1295_s25  ;;  %1007 = vst.msk [vmem:[%s1637_s24] sm:$0xff] %vm1006_vm1, %v280_v2  ;;  %v575_v4 = vsel %vm1676_vm15, %v1351_v16, %v572_v3  ;;  %1032 = vst.msk [vmem:[%s1660_s28] sm:$0xff] %vm1006_vm1, %v693_v38  ;;  %v345_v32 = vsub.s32 %v341_v53, %v344_v1  ;;  %v995_v18 = vadd.s32 3, %v576_v8  ;;  %v580_v31 = vand.u32 3, %v576_v8 }
  0x83   : > { %1242 = vcosq.f32 %v575_v4  ;;  %vm579_vm8 = vweird.f32 %v1351_v16  ;;  %vm283_vm9 = vcmp.lt.s32.totalorder %v1458_v34, 0  ;;  %v367_v16 = vsub.s32 4, %v1672_v42 }
  0x84   : > { %1244 = vsinq.f32 %v575_v4  ;;  %v347_v7 = vsub.s32 0, %v345_v32  ;;  %v996_v43 = vand.u32 3, %v995_v18  ;;  %vm585_vm2 = vcmp.eq.s32.totalorder %v580_v31, 2 }
  0x85   : > { %vm581_vm4 = vcmp.lt.s32.totalorder %v580_v31, 2  ;;  %vm582_vm5 = vcmp.eq.s32.totalorder %v580_v31, 0  ;;  %vm282_vm10 = vcmp.le.f32.partialorder %v281_v39, 0.7853982  ;;  %v368_v41 = vsel %vm283_vm9, %v367_v16, %v1672_v42 }
  0x86   : > { %1040 = vrot.lane.b32.xlu0 %v693_v38, %s1295_s25  ;;  %v1163_v11 = vmin.u32 %v347_v7, %v345_v32  ;;  %vm1001_vm3 = vcmp.eq.s32.totalorder %v996_v43, 2  ;;  %vm998_vm6 = vcmp.eq.s32.totalorder %v996_v43, 0  ;;  %vm997_vm7 = vcmp.lt.s32.totalorder %v996_v43, 2 }
  0x87   : > { %v370_v44 = vsel %vm282_vm10, 0, %v368_v41 }
  0x88   : > { %v349_v10 = vclz %v1163_v11  ;;  %v787_v56 = vadd.s32 3, %v370_v44  ;;  %v374_v58 = vand.u32 3, %v370_v44 }
  0x8a   : > { %v1164_v19 = vadd.s32 4294967294, %v349_v10  ;;  %v788_v57 = vand.u32 3, %v787_v56  ;;  %vm379_vm12 = vcmp.eq.s32.totalorder %v374_v58, 2  ;;  %vm376_vm14 = vcmp.eq.s32.totalorder %v374_v58, 0 }
  0x8c   : > { %vm1165_vm0 = vcmp.lt.s32.totalorder %v1164_v19, 0  ;;  %vm793_vm11 = vcmp.eq.s32.totalorder %v788_v57, 2  ;;  %vm790_vm13 = vcmp.eq.s32.totalorder %v788_v57, 0  ;;  %vm789_vm15 = vcmp.lt.s32.totalorder %v788_v57, 2 }
  0x8d   : > { %v352_v20 = vsel %vm1165_vm0, 0, %v1164_v19  ;;  %vm375_vm0 = vcmp.lt.s32.totalorder %v374_v58, 2 }
  0x8e   : > { %v353_v55 = vsub.s32 32, %v352_v20  ;;  %v354_v21 = vshll.u32 %v345_v32, %v352_v20  ;;  %v357_v14 = vsub.s32 4294967266, %v352_v20 }
  0x90   : > { %v1243_v22 = vpop.eup %1242  ;;  %v355_v24 = vshrl.u32 %v337_v40, %v353_v55  ;;  %v358_v37 = vadd.s32 127, %v357_v14 }
  0x91   : > { %v1245_v25 = vpop.eup %1244  ;;  %v586_v28 = vxor.u32 2147483648, %v1243_v22 }
  0x92   : > { %v583_v29 = vxor.u32 2147483648, %v1245_v25  ;;  %v356_v30 = vor.u32 %v355_v24, %v354_v21  ;;  %v359_v5 = vshll.u32 %v358_v37, 23 }
  0x93   : > { %v587_v26 = vsel %vm585_vm2, %v586_v28, %v1245_v25  ;;  %v1003_v35 = vsel %vm1001_vm3, %v586_v28, %v1245_v25  ;;  %vm373_vm2 = vweird.f32 %v1458_v34  ;;  %vm1027_vm3 = vcmask 523520  }
  0x94   : > { %v584_v27 = vsel %vm582_vm5, %v1243_v22, %v583_v29  ;;  %v360_v9 = vor.u32 4788187, %v359_v5  ;;  %v363_v49 = vcvt.s32.f32 %v356_v30  ;;  %v1000_v46 = vsel %vm998_vm6, %v1243_v22, %v583_v29 }
  0x95   : > { %v588_v48 = vsel %vm581_vm4, %v584_v27, %v587_v26  ;;  %v1004_v50 = vsel %vm997_vm7, %v1000_v46, %v1003_v35 }
  0x96   : > { %v589_v47 = vsel %vm579_vm8, nan, %v588_v48  ;;  %v361_v51 = vand.u32 2147483647, %v360_v9  ;;  %v1005_v36 = vsel %vm579_vm8, nan, %v1004_v50 }
  0x97   : > { %1010 = vst.msk [vmem:[%s1637_s24 + $0x18] sm:$0xff] %vm1006_vm1, %v589_v47  ;;  %1021 = vrot.lane.b32.xlu1 %v589_v47, %s1295_s25  ;;  %1035 = vst.msk [vmem:[%s1660_s28 + $0x18] sm:$0xff] %vm1006_vm1, %v1005_v36 }
  0x98   : > { %v364_v15 = vmul.f32 %v363_v49, %v361_v51 }
  0x9a   : > { %v365_v52 = vxor.u32 2147483648, %v364_v15 }
  0x9c   : > { %v366_v53 = vsel %vm283_vm9, %v365_v52, %v364_v15 }
  0x9d   : > { %v369_v54 = vsel %vm282_vm10, %v1458_v34, %v366_v53 }
  0x9e   : > { %1246 = vcosq.f32 %v369_v54 }
  0x9f   : > { %1248 = vsinq.f32 %v369_v54 }
  0xab   : > { %v1247_v45 = vpop.eup %1246 }
  0xac   : > { %v1249_v0 = vpop.eup %1248  ;;  %v380_v59 = vxor.u32 2147483648, %v1247_v45 }
  0xad   : > { %v377_v39 = vxor.u32 2147483648, %v1249_v0 }
  0xae   : > { %v795_v13 = vsel %vm793_vm11, %v380_v59, %v1249_v0  ;;  %v381_v42 = vsel %vm379_vm12, %v380_v59, %v1249_v0 }
  0xaf   : > { %v792_v60 = vsel %vm790_vm13, %v1247_v45, %v377_v39  ;;  %v378_v6 = vsel %vm376_vm14, %v1247_v45, %v377_v39 }
  0xb0   : > { %v796_v12 = vsel %vm789_vm15, %v792_v60, %v795_v13  ;;  %v382_v23 = vsel %vm375_vm0, %v378_v6, %v381_v42 }
  0xb1   : > { %v797_v61 = vsel %vm373_vm2, nan, %v796_v12  ;;  %v383_v62 = vsel %vm373_vm2, nan, %v382_v23 }
  0xb2   : > { %1042 = vrot.lane.b32.xlu1 %v797_v61, %s1295_s25  ;;  %1033 = vst.msk [vmem:[%s1660_s28 + $0x8] sm:$0xff] %vm1006_vm1, %v797_v61  ;;  %1008 = vst.msk [vmem:[%s1637_s24 + $0x8] sm:$0xff] %vm1006_vm1, %v383_v62  ;;  %1017 = vrot.lane.b32.xlu0 %v383_v62, %s1295_s25 }
  0xb6   : > { %1046 = vrot.lane.b32.xlu1 %v1005_v36, %s1295_s25  ;;  %1044 = vrot.lane.b32.xlu0 %v1664_v17, %s1295_s25 }
  0xec   : > { %v1020_v34 = vpop.permute.xlu1 %1019 }
  0xed   : > { %1030 = vst.msk [vmem:[%s1637_s24 + $0x10] sm:$0xff] %vm1027_vm3, %v1020_v34 }
  0xf4   : > { %v1016_v63 = vpop.permute.xlu0 %1015 }
  0xf5   : > { %1028 = vst.msk [vmem:[%s1637_s24] sm:$0xff] %vm1027_vm3, %v1016_v63 }
  0xf8   : > { %v1041_v1 = vpop.permute.xlu0 %1040 }
  0xf9   : > { %1052 = vst.msk [vmem:[%s1660_s28] sm:$0xff] %vm1027_vm3, %v1041_v1 }
 0x109   : > { %v1022_v2 = vpop.permute.xlu1 %1021 }
 0x10a   : > { %1031 = vst.msk [vmem:[%s1637_s24 + $0x18] sm:$0xff] %vm1027_vm3, %v1022_v2 }
 0x124   : > { %v1043_v3 = vpop.permute.xlu1 %1042  ;;  %v1018_v38 = vpop.permute.xlu0 %1017 }
 0x125   : > { %1053 = vst.msk [vmem:[%s1660_s28 + $0x8] sm:$0xff] %vm1027_vm3, %v1043_v3  ;;  %1029 = vst.msk [vmem:[%s1637_s24 + $0x8] sm:$0xff] %vm1027_vm3, %v1018_v38 }
 0x128   : > { %v1047_v17 = vpop.permute.xlu1 %1046  ;;  %v1045_v4 = vpop.permute.xlu0 %1044 }
 0x129   : > { %1055 = vst.msk [vmem:[%s1660_s28 + $0x18] sm:$0xff] %vm1027_vm3, %v1047_v17  ;;  %1054 = vst.msk [vmem:[%s1660_s28 + $0x10] sm:$0xff] %vm1027_vm3, %v1045_v4 }
 0x12a PF: > { %s14_s9 = sadd.s32 1, %s1286_s9  }
 0x12b   : > { %p11_p1 = scmp.ge.s32.totalorder %s14_s9, 6  }
 0x12d   :  { %13 = sbr.rel (!%p11_p1) target bundleno = 1 (0x1), region = 68 }
 0x132   :  { %1095 = vsyncpa [#allocation3], 1 }
 0x133   :  { %1097 = vsyncpa [#allocation3 + $0x1], 1 }

</bundles_post_ra>
